<compile_context>
chip_gen: v7x
topology: tpu7x:2x2x1
jax: 0.10.0
libtpu: 0.0.40
codegen_flags: <defaults>
</compile_context>

<pallas_src>
import math

import jax
import jax.numpy as jnp
from jax.experimental import pallas as pl
from jax.experimental.pallas import tpu as pltpu

BN_EPS = 1e-5


def simclr_mlp_kernel(z_ref, w1_ref, gamma_ref, beta_ref, w2_ref, b2_ref,
                      o0_ref, o1_ref, acc_ref):
    """One H-tile of: Linear -> BatchNorm1d(batch stats) -> ReLU -> Linear.

    z_ref holds the fused (2B, D) batch (z0 stacked on z1); the two projector
    outputs are split only in the k == last epilogue.
    """
    k = pl.program_id(0)

    @pl.when(k == 0)
    def _():
        acc_ref[...] = jnp.zeros_like(acc_ref)

    # ---- Linear 1 on the MXU: one 2B-row GEMM per H tile (bf16 operands, f32 acc).
    # b1 is intentionally omitted: under batch-stat BatchNorm it is exactly
    # cancelled by the mean subtraction.
    h = jnp.dot(z_ref[...], w1_ref[...],
                preferred_element_type=jnp.float32)           # (2B, tH) f32

    # ---- BatchNorm1d (training mode) over the full 2B batch, per feature.
    # Single reduction pass: var = E[h^2] - mean^2 (no "h - mean" temporaries).
    inv_n = 1.0 / h.shape[0]
    mean = jnp.sum(h, axis=0, keepdims=True) * inv_n          # (1, tH)
    mean_sq = jnp.sum(h * h, axis=0, keepdims=True) * inv_n   # (1, tH)
    var = jnp.maximum(mean_sq - mean * mean, 0.0)
    inv_std = jax.lax.rsqrt(var + BN_EPS)

    # gamma/beta are resident (n_tiles, tH) slabs; grab this tile's row.
    g = gamma_ref[pl.ds(k, 1), :]                             # (1, tH) f32
    b = beta_ref[pl.ds(k, 1), :]                              # (1, tH) f32

    # Fold BN into a single per-feature scale/shift, then ReLU.
    s = g * inv_std
    t = b - mean * s
    a = jnp.maximum(h * s + t, 0.0).astype(jnp.bfloat16)      # (2B, tH) bf16

    # ---- Linear 2: partial contribution of this H tile (MXU, f32 acc).
    acc_ref[...] += jnp.dot(a, w2_ref[...],
                            preferred_element_type=jnp.float32)

    @pl.when(k == pl.num_programs(0) - 1)
    def _():
        out = acc_ref[...] + b2_ref[...]                      # (2B, O_pad) f32
        B = o0_ref.shape[0]
        o0_ref[...] = out[:B].astype(o0_ref.dtype)
        o1_ref[...] = out[B:].astype(o1_ref.dtype)


def _round_up(x, m):
    return x if x % m == 0 else ((x + m - 1) // m) * m


def _vmem_capacity_bytes():
    try:
        return int(pltpu.get_tpu_info().vmem_capacity_bytes)
    except Exception:
        return 128 << 20


def _pick_tile_h(H, vmem_capacity_bytes):
    """Largest H-tile <= target that is a multiple of 128 and divides H.

    Target 1024 on 128 MiB-VMEM chips (v5e/v6e), 512 on 64 MiB (v7x).
    """
    target = 1024 if vmem_capacity_bytes >= (96 << 20) else 512
    if H <= target or H % 128 != 0:
        return H
    for t in range(target, 127, -128):
        if H % t == 0:
            return t
    return H


def prepare_params(params, *, tile_h=None):
    """One-time conversion of projector params to the kernel's persistent layout.

    Hoists bf16 weight casts and O-padding of w2/b2 out of the per-call path.
    b1 is kept in the raw params for module fidelity but is a mathematical no-op
    under batch-stat BatchNorm, so it is dropped here.
    """
    w1 = jnp.asarray(params["w1"], jnp.bfloat16)
    D, H = w1.shape
    w2 = jnp.asarray(params["w2"], jnp.bfloat16)
    O = w2.shape[1]

    cap = _vmem_capacity_bytes()
    tH = tile_h if tile_h is not None else _pick_tile_h(H, cap)
    if H % tH != 0:
        tH = H
    n_tiles = H // tH

    O_pad = max(_round_up(O, 128), 128)   # lane-dense output stores
    if O_pad != O:
        w2 = jnp.pad(w2, ((0, 0), (0, O_pad - O)))

    b2 = jnp.asarray(params["b2"], jnp.float32).reshape(1, O)
    if O_pad != O:
        b2 = jnp.pad(b2, ((0, 0), (0, O_pad - O)))

    gamma = jnp.asarray(params["gamma"], jnp.float32).reshape(n_tiles, tH)
    beta = jnp.asarray(params["beta"], jnp.float32).reshape(n_tiles, tH)

    return {"w1": w1, "w2": w2, "b2": b2, "gamma": gamma, "beta": beta,
            "D": D, "H": H, "O": O, "O_pad": O_pad,
            "tile_h": tH, "n_tiles": n_tiles, "vmem_capacity": cap}


def _build_call(B, D, H, O_pad, tH, n_tiles, out_dtype, vmem_cap, use_buffered):
    def resident(shape, imap):
        # Constant-index blocks: single-buffer them (pure VMEM saving).
        if use_buffered:
            return pl.BlockSpec(shape, imap, pipeline_mode=pl.Buffered(1))
        return pl.BlockSpec(shape, imap)

    in_specs = [
        resident((2 * B, D), lambda k: (0, 0)),       # z (fused 2B rows, resident)
        pl.BlockSpec((D, tH), lambda k: (0, k)),      # w1 H-tile (streamed)
        resident((n_tiles, tH), lambda k: (0, 0)),    # gamma (resident, all tiles)
        resident((n_tiles, tH), lambda k: (0, 0)),    # beta  (resident, all tiles)
        pl.BlockSpec((tH, O_pad), lambda k: (k, 0)),  # w2 H-tile (streamed)
        resident((1, O_pad), lambda k: (0, 0)),       # b2 (resident)
    ]
    out_specs = [
        resident((B, O_pad), lambda k: (0, 0)),       # proj_00 (resident)
        resident((B, O_pad), lambda k: (0, 0)),       # proj_01 (resident)
    ]

    out_itemsize = jnp.dtype(out_dtype).itemsize
    res_bufs = 1 if use_buffered else 2
    vmem_bytes = (
        res_bufs * (2 * B * D * 2)                    # z (bf16)
        + 2 * (D * tH * 2)                            # w1 tiles (double-buffered)
        + 2 * (tH * O_pad * 2)                        # w2 tiles (double-buffered)
        + res_bufs * (2 * H * 4)                      # gamma + beta
        + res_bufs * (O_pad * 4)                      # b2
        + res_bufs * (2 * B * O_pad * out_itemsize)   # outputs
        + (2 * B * O_pad * 4)                         # f32 accumulator scratch
        + 3 * (2 * B * tH * 4)                        # h / h*h / activation working set
    )
    vmem_limit = int(min(int(0.75 * vmem_cap),
                         max(8 << 20, int(1.25 * vmem_bytes) + (2 << 20))))

    flops = 2 * (2 * B) * D * H + 2 * (2 * B) * H * O_pad
    bytes_accessed = int(
        (2 * B * D + D * H + H * O_pad) * 2           # bf16 activations + weights
        + (2 * H + O_pad) * 4                         # gamma/beta/b2
        + 2 * B * O_pad * out_itemsize                # outputs
    )

    # TODO(synk): on v7x, split the H tiles across the two TensorCores with a
    # leading 'parallel' grid axis producing per-core partial (2B, O_pad) slabs
    # summed in the wrapper (or reduced via CMEM); single-core path kept here.
    # TODO(synk): on v5e (weight-streaming bound at small B) deepen the w1
    # pipeline (pipeline_mode=pl.Buffered(3)) and/or shrink tH to 256.
    return pl.pallas_call(
        simclr_mlp_kernel,
        out_shape=(
            jax.ShapeDtypeStruct((B, O_pad), out_dtype),
            jax.ShapeDtypeStruct((B, O_pad), out_dtype),
        ),
        grid_spec=pltpu.PrefetchScalarGridSpec(
            num_scalar_prefetch=0,
            grid=(n_tiles,),
            in_specs=in_specs,
            out_specs=out_specs,
            scratch_shapes=[pltpu.VMEM((2 * B, O_pad), jnp.float32)],
        ),
        compiler_params=pltpu.CompilerParams(
            dimension_semantics=("arbitrary",),       # H is a reduction axis
            vmem_limit_bytes=vmem_limit,
        ),
        cost_estimate=pl.CostEstimate(
            flops=flops, transcendentals=H, bytes_accessed=bytes_accessed),
    )


def projection_header_forward(z0, z1, params, *, tile_h=None):
    """Pallas-backed ProjectionHeader.forward (SimCLR MLP projector, nn_queue=None).

    Returns (proj_00, proj_01), matching the PyTorch module's header_out dict.
    `params` may be a raw parameter dict or the result of prepare_params()
    (preferred: hoists weight bf16 casts / padding out of the per-call path).

    NOTE: at tiny B this path is launch-overhead dominated (M-starved MXU);
    production use should gate on SimCLR-scale B (hundreds+) with D, H ~ 2048,
    falling back to plain XLA otherwise.
    """
    assert z0.shape == z1.shape and z0.ndim == 2
    B, D = z0.shape
    prep = params if "tile_h" in params else prepare_params(params, tile_h=tile_h)
    assert prep["D"] == D

    out_dtype = z0.dtype
    H, O, O_pad = prep["H"], prep["O"], prep["O_pad"]
    tH, n_tiles = prep["tile_h"], prep["n_tiles"]

    # Fused 2B-row batch: one XLA pass (concat + bf16 cast fuse). Producers that
    # already emit bf16 activations make this pass cheaper still.
    z = jnp.concatenate([z0, z1], axis=0).astype(jnp.bfloat16)
    args = (z, prep["w1"], prep["gamma"], prep["beta"], prep["w2"], prep["b2"])

    use_buffered = hasattr(pl, "Buffered")
    try:
        call = _build_call(B, D, H, O_pad, tH, n_tiles, out_dtype,
                           prep["vmem_capacity"], use_buffered)
        out0, out1 = call(*args)
    except Exception:
        if not use_buffered:
            raise
        # Version-portability fallback: identical kernel, default double-buffering.
        call = _build_call(B, D, H, O_pad, tH, n_tiles, out_dtype,
                           prep["vmem_capacity"], False)
        out0, out1 = call(*args)

    if O_pad != O:
        out0 = out0[:, :O]
        out1 = out1[:, :O]
    return out0, out1


def init_params(key, backbone_feature_dim, hidden_dim, output_dim, dtype=jnp.float32):
    """Deterministic synthetic parameter init (shapes match the PyTorch module)."""
    k1, k2, k3, k4 = jax.random.split(key, 4)
    w1 = jax.random.normal(k1, (backbone_feature_dim, hidden_dim), dtype) / math.sqrt(backbone_feature_dim)
    b1 = jax.random.normal(k2, (1, hidden_dim), dtype) * 0.01
    gamma = jnp.ones((1, hidden_dim), dtype)
    beta = jnp.zeros((1, hidden_dim), dtype)
    w2 = jax.random.normal(k3, (hidden_dim, output_dim), dtype) / math.sqrt(hidden_dim)
    b2 = jax.random.normal(k4, (1, output_dim), dtype) * 0.01
    return {"w1": w1, "b1": b1, "gamma": gamma, "beta": beta, "w2": w2, "b2": b2}


def _reference(z0, z1, params):
    """Pure-JAX reference mirroring the kernel's bf16-operand / f32-accumulate matmuls."""
    f32 = jnp.float32
    z = jnp.concatenate([z0, z1], axis=0).astype(jnp.bfloat16).astype(f32)
    w1 = params["w1"].astype(jnp.bfloat16).astype(f32)
    w2 = params["w2"].astype(jnp.bfloat16).astype(f32)
    h = z @ w1 + params["b1"].astype(f32)          # b1 included: cancelled by BN below
    mean = jnp.mean(h, axis=0, keepdims=True)
    var = jnp.mean((h - mean) ** 2, axis=0, keepdims=True)
    h = (h - mean) * jax.lax.rsqrt(var + BN_EPS) * params["gamma"].astype(f32) \
        + params["beta"].astype(f32)
    a = jnp.maximum(h, 0.0).astype(jnp.bfloat16).astype(f32)
    out = (a @ w2 + params["b2"].astype(f32)).astype(z0.dtype)
    B = z0.shape[0]
    return out[:B], out[B:]


if __name__ == "__main__":
    # Small shapes consistent with the module: B=8, backbone_feature_dim=64,
    # hidden_dim=256 (tiled as 2 x 128 to exercise the H-accumulation path),
    # output_dim=32 (padded to 128 lanes inside the kernel).
    B, D, H, O = 8, 64, 256, 32
    key = jax.random.PRNGKey(0)
    kz0, kz1, kp = jax.random.split(key, 3)

    z0 = jax.random.normal(kz0, (B, D), jnp.float32)   # header_input.feature_0
    z1 = jax.random.normal(kz1, (B, D), jnp.float32)   # header_input.feature_1
    params = init_params(kp, D, H, O)

    prepared = prepare_params(params, tile_h=128)      # one-time weight prep
    proj_00, proj_01 = projection_header_forward(z0, z1, prepared)
    jax.block_until_ready((proj_00, proj_01))

    # Cross-check against the pure-JAX reference.
    ref_00, ref_01 = _reference(z0, z1, params)
    assert proj_00.shape == (B, O) and proj_01.shape == (B, O)
    err0 = float(jnp.max(jnp.abs(proj_00 - ref_00)))
    err1 = float(jnp.max(jnp.abs(proj_01 - ref_01)))
    assert jnp.allclose(proj_00, ref_00, atol=5e-3, rtol=5e-3), err0
    assert jnp.allclose(proj_01, ref_01, atol=5e-3, rtol=5e-3), err1

    # TODO(synk): 'RandomProjection' / 'Linear' / 'VICReg' / 'Direct' projector
    # variants, eval-mode BN (running stats), enable_final_batchnorm, and the
    # nn_queue branch are module configurations not implemented here; only the
    # training-mode SimCLR MLP projector path is implemented.
    print("KERNEL_OK")
</pallas_src>

<mosaic_0001>
module attributes {stable_mosaic.version = 11 : i64} {
  func.func @simclr_mlp_kernel(%arg0: i32, %arg1: memref<16x64xbf16, #tpu.memory_space<vmem>>, %arg2: memref<64x128xbf16, #tpu.memory_space<vmem>>, %arg3: memref<2x128xf32, #tpu.memory_space<vmem>>, %arg4: memref<2x128xf32, #tpu.memory_space<vmem>>, %arg5: memref<128x128xbf16, #tpu.memory_space<vmem>>, %arg6: memref<1x128xf32, #tpu.memory_space<vmem>>, %arg7: memref<8x128xf32, #tpu.memory_space<vmem>>, %arg8: memref<8x128xf32, #tpu.memory_space<vmem>>, %arg9: memref<16x128xf32, #tpu.memory_space<vmem>>) attributes {dimension_semantics = [#tpu.dimension_semantics<arbitrary>], iteration_bounds = array<i64: 2>, scalar_prefetch = 0 : i64, scratch_operands = 1 : i64, tpu.core_type = #tpu.core_type<tc>, window_params = [{pipeline_mode = #tpu.pipeline_mode<synchronous>, transform_indices = @transform_0, window_bounds = array<i64: 16, 64>}, {transform_indices = @transform_1, window_bounds = array<i64: 64, 128>}, {pipeline_mode = #tpu.pipeline_mode<synchronous>, transform_indices = @transform_2, window_bounds = array<i64: 2, 128>}, {pipeline_mode = #tpu.pipeline_mode<synchronous>, transform_indices = @transform_3, window_bounds = array<i64: 2, 128>}, {transform_indices = @transform_4, window_bounds = array<i64: 128, 128>}, {pipeline_mode = #tpu.pipeline_mode<synchronous>, transform_indices = @transform_5, window_bounds = array<i64: 1, 128>}, {pipeline_mode = #tpu.pipeline_mode<synchronous>, transform_indices = @transform_6, window_bounds = array<i64: 8, 128>}, {pipeline_mode = #tpu.pipeline_mode<synchronous>, transform_indices = @transform_7, window_bounds = array<i64: 8, 128>}]} {
    %c0_i32 = arith.constant 0 : i32
    %0 = arith.cmpi eq, %arg0, %c0_i32 : i32
    %1 = arith.extui %0 : i1 to i32
    %c0_i32_0 = arith.constant 0 : i32
    %2 = arith.cmpi ne, %1, %c0_i32_0 : i32
    scf.if %2 {
      %cst_21 = arith.constant 0.000000e+00 : f32
      %44 = vector.broadcast %cst_21 : f32 to vector<16x128xf32>
      %c0_22 = arith.constant 0 : index
      %c0_23 = arith.constant 0 : index
      %45 = vector.load %arg9[%c0_22, %c0_23] : memref<16x128xf32, #tpu.memory_space<vmem>>, vector<16x128xf32>
      tpu.vector_store %arg9[%c0_22, %c0_23], %44 {strides = array<i32>} : memref<16x128xf32, #tpu.memory_space<vmem>>, vector<16x128xf32>,
    } else {
    }
    %c0 = arith.constant 0 : index
    %c0_1 = arith.constant 0 : index
    %3 = vector.load %arg1[%c0, %c0_1] : memref<16x64xbf16, #tpu.memory_space<vmem>>, vector<16x64xbf16>
    %c0_2 = arith.constant 0 : index
    %c0_3 = arith.constant 0 : index
    %4 = vector.load %arg2[%c0_2, %c0_3] : memref<64x128xbf16, #tpu.memory_space<vmem>>, vector<64x128xbf16>
    %cst = arith.constant dense<0.000000e+00> : vector<16x128xf32>
    %5 = tpu.matmul %3, %4, %cst {dimension_numbers = #tpu.dot_dimension_numbers<[1], [0], [0], [1], [0, 0, 1, 1], [], []>} : vector<16x64xbf16>, vector<64x128xbf16>, vector<16x128xf32> -> vector<16x128xf32>
    %cst_4 = arith.constant dense<0.000000e+00> : vector<128xf32>
    %6 = vector.multi_reduction <add>, %5, %cst_4 [0] : vector<16x128xf32> to vector<128xf32>
    %7 = vector.shape_cast %6 : vector<128xf32> to vector<1x128xf32>
    %cst_5 = arith.constant 6.250000e-02 : f32
    %8 = vector.broadcast %cst_5 : f32 to vector<1x128xf32>
    %9 = arith.mulf %7, %8 : vector<1x128xf32>
    %10 = arith.mulf %5, %5 : vector<16x128xf32>
    %cst_6 = arith.constant dense<0.000000e+00> : vector<128xf32>
    %11 = vector.multi_reduction <add>, %10, %cst_6 [0] : vector<16x128xf32> to vector<128xf32>
    %12 = vector.shape_cast %11 : vector<128xf32> to vector<1x128xf32>
    %cst_7 = arith.constant 6.250000e-02 : f32
    %13 = vector.broadcast %cst_7 : f32 to vector<1x128xf32>
    %14 = arith.mulf %12, %13 : vector<1x128xf32>
    %15 = arith.mulf %9, %9 : vector<1x128xf32>
    %16 = arith.subf %14, %15 : vector<1x128xf32>
    %cst_8 = arith.constant 0.000000e+00 : f32
    %17 = vector.broadcast %cst_8 : f32 to vector<1x128xf32>
    %18 = arith.maximumf %16, %17 : vector<1x128xf32>
    %cst_9 = arith.constant 9.99999974E-6 : f32
    %19 = vector.broadcast %cst_9 : f32 to vector<1x128xf32>
    %20 = arith.addf %18, %19 : vector<1x128xf32>
    %21 = math.rsqrt %20 : vector<1x128xf32>
    %22 = arith.index_cast %arg0 : i32 to index
    %c0_10 = arith.constant 0 : index
    %23 = vector.load %arg3[%22, %c0_10] : memref<2x128xf32, #tpu.memory_space<vmem>>, vector<1x128xf32>
    %24 = arith.index_cast %arg0 : i32 to index
    %c0_11 = arith.constant 0 : index
    %25 = vector.load %arg4[%24, %c0_11] : memref<2x128xf32, #tpu.memory_space<vmem>>, vector<1x128xf32>
    %26 = arith.mulf %23, %21 : vector<1x128xf32>
    %27 = arith.mulf %9, %26 : vector<1x128xf32>
    %28 = arith.subf %25, %27 : vector<1x128xf32>
    %29 = vector.broadcast %26 : vector<1x128xf32> to vector<16x128xf32>
    %30 = arith.mulf %5, %29 : vector<16x128xf32>
    %31 = vector.broadcast %28 : vector<1x128xf32> to vector<16x128xf32>
    %32 = arith.addf %30, %31 : vector<16x128xf32>
    %cst_12 = arith.constant 0.000000e+00 : f32
    %33 = vector.broadcast %cst_12 : f32 to vector<16x128xf32>
    %34 = arith.maximumf %32, %33 : vector<16x128xf32>
    %35 = arith.truncf %34 : vector<16x128xf32> to vector<16x128xbf16>
    %c0_13 = arith.constant 0 : index
    %c0_14 = arith.constant 0 : index
    %36 = vector.load %arg9[%c0_13, %c0_14] : memref<16x128xf32, #tpu.memory_space<vmem>>, vector<16x128xf32>
    %c0_15 = arith.constant 0 : index
    %c0_16 = arith.constant 0 : index
    %37 = vector.load %arg5[%c0_15, %c0_16] : memref<128x128xbf16, #tpu.memory_space<vmem>>, vector<128x128xbf16>
    %cst_17 = arith.constant dense<0.000000e+00> : vector<16x128xf32>
    %38 = tpu.matmul %35, %37, %cst_17 {dimension_numbers = #tpu.dot_dimension_numbers<[1], [0], [0], [1], [0, 0, 1, 1], [], []>} : vector<16x128xbf16>, vector<128x128xbf16>, vector<16x128xf32> -> vector<16x128xf32>
    %39 = arith.addf %36, %38 : vector<16x128xf32>
    %c0_18 = arith.constant 0 : index
    %c0_19 = arith.constant 0 : index
    %40 = vector.load %arg9[%c0_18, %c0_19] : memref<16x128xf32, #tpu.memory_space<vmem>>, vector<16x128xf32>
    tpu.vector_store %arg9[%c0_18, %c0_19], %39 {strides = array<i32>} : memref<16x128xf32, #tpu.memory_space<vmem>>, vector<16x128xf32>,
    %c1_i32 = arith.constant 1 : i32
    %41 = arith.cmpi eq, %arg0, %c1_i32 : i32
    %42 = arith.extui %41 : i1 to i32
    %c0_i32_20 = arith.constant 0 : i32
    %43 = arith.cmpi ne, %42, %c0_i32_20 : i32
    scf.if %43 {
      %c0_21 = arith.constant 0 : index
      %c0_22 = arith.constant 0 : index
      %44 = vector.load %arg9[%c0_21, %c0_22] : memref<16x128xf32, #tpu.memory_space<vmem>>, vector<16x128xf32>
      %c0_23 = arith.constant 0 : index
      %c0_24 = arith.constant 0 : index
      %45 = vector.load %arg6[%c0_23, %c0_24] : memref<1x128xf32, #tpu.memory_space<vmem>>, vector<1x128xf32>
      %46 = vector.broadcast %45 : vector<1x128xf32> to vector<16x128xf32>
      %47 = arith.addf %44, %46 : vector<16x128xf32>
      %48 = vector.extract_strided_slice %47 {offsets = [0, 0], sizes = [8, 128], strides = [1, 1]} : vector<16x128xf32> to vector<8x128xf32>
      %c0_25 = arith.constant 0 : index
      %c0_26 = arith.constant 0 : index
      %49 = vector.load %arg7[%c0_25, %c0_26] : memref<8x128xf32, #tpu.memory_space<vmem>>, vector<8x128xf32>
      tpu.vector_store %arg7[%c0_25, %c0_26], %48 {strides = array<i32>} : memref<8x128xf32, #tpu.memory_space<vmem>>, vector<8x128xf32>,
      %50 = vector.extract_strided_slice %47 {offsets = [8, 0], sizes = [8, 128], strides = [1, 1]} : vector<16x128xf32> to vector<8x128xf32>
      %c0_27 = arith.constant 0 : index
      %c0_28 = arith.constant 0 : index
      %51 = vector.load %arg8[%c0_27, %c0_28] : memref<8x128xf32, #tpu.memory_space<vmem>>, vector<8x128xf32>
      tpu.vector_store %arg8[%c0_27, %c0_28], %50 {strides = array<i32>} : memref<8x128xf32, #tpu.memory_space<vmem>>, vector<8x128xf32>,
    } else {
    }
    return
  }
  func.func @transform_0(%arg0: i32) -> (i32, i32) {
    %c0_i32 = arith.constant 0 : i32
    %c0_i32_0 = arith.constant 0 : i32
    %c0_i32_1 = arith.constant 0 : i32
    return %c0_i32, %c0_i32_0 : i32, i32
  }
  func.func @transform_1(%arg0: i32) -> (i32, i32) {
    %c0_i32 = arith.constant 0 : i32
    %c0_i32_0 = arith.constant 0 : i32
    return %c0_i32, %arg0 : i32, i32
  }
  func.func @transform_2(%arg0: i32) -> (i32, i32) {
    %c0_i32 = arith.constant 0 : i32
    %c0_i32_0 = arith.constant 0 : i32
    %c0_i32_1 = arith.constant 0 : i32
    return %c0_i32, %c0_i32_0 : i32, i32
  }
  func.func @transform_3(%arg0: i32) -> (i32, i32) {
    %c0_i32 = arith.constant 0 : i32
    %c0_i32_0 = arith.constant 0 : i32
    %c0_i32_1 = arith.constant 0 : i32
    return %c0_i32, %c0_i32_0 : i32, i32
  }
  func.func @transform_4(%arg0: i32) -> (i32, i32) {
    %c0_i32 = arith.constant 0 : i32
    %c0_i32_0 = arith.constant 0 : i32
    return %arg0, %c0_i32 : i32, i32
  }
  func.func @transform_5(%arg0: i32) -> (i32, i32) {
    %c0_i32 = arith.constant 0 : i32
    %c0_i32_0 = arith.constant 0 : i32
    %c0_i32_1 = arith.constant 0 : i32
    return %c0_i32, %c0_i32_0 : i32, i32
  }
  func.func @transform_6(%arg0: i32) -> (i32, i32) {
    %c0_i32 = arith.constant 0 : i32
    %c0_i32_0 = arith.constant 0 : i32
    %c0_i32_1 = arith.constant 0 : i32
    return %c0_i32, %c0_i32_0 : i32, i32
  }
  func.func @transform_7(%arg0: i32) -> (i32, i32) {
    %c0_i32 = arith.constant 0 : i32
    %c0_i32_0 = arith.constant 0 : i32
    %c0_i32_1 = arith.constant 0 : i32
    return %c0_i32, %c0_i32_0 : i32, i32
  }
}

module attributes {stable_mosaic.version = 11 : i64} {
  func.func @simclr_mlp_kernel(%arg0: i32, %arg1: memref<16x64xbf16, #tpu.memory_space<vmem>>, %arg2: memref<64x128xbf16, #tpu.memory_space<vmem>>, %arg3: memref<2x128xf32, #tpu.memory_space<vmem>>, %arg4: memref<2x128xf32, #tpu.memory_space<vmem>>, %arg5: memref<128x128xbf16, #tpu.memory_space<vmem>>, %arg6: memref<1x128xf32, #tpu.memory_space<vmem>>, %arg7: memref<8x128xf32, #tpu.memory_space<vmem>>, %arg8: memref<8x128xf32, #tpu.memory_space<vmem>>, %arg9: memref<16x128xf32, #tpu.memory_space<vmem>>) attributes {dimension_semantics = [#tpu.dimension_semantics<arbitrary>], iteration_bounds = array<i64: 2>, scalar_prefetch = 0 : i64, scratch_operands = 1 : i64, tpu.core_type = #tpu.core_type<tc>, window_params = [{pipeline_mode = #tpu.pipeline_mode<synchronous>, transform_indices = @transform_0, window_bounds = array<i64: 16, 64>}, {transform_indices = @transform_1, window_bounds = array<i64: 64, 128>}, {pipeline_mode = #tpu.pipeline_mode<synchronous>, transform_indices = @transform_2, window_bounds = array<i64: 2, 128>}, {pipeline_mode = #tpu.pipeline_mode<synchronous>, transform_indices = @transform_3, window_bounds = array<i64: 2, 128>}, {transform_indices = @transform_4, window_bounds = array<i64: 128, 128>}, {pipeline_mode = #tpu.pipeline_mode<synchronous>, transform_indices = @transform_5, window_bounds = array<i64: 1, 128>}, {pipeline_mode = #tpu.pipeline_mode<synchronous>, transform_indices = @transform_6, window_bounds = array<i64: 8, 128>}, {pipeline_mode = #tpu.pipeline_mode<synchronous>, transform_indices = @transform_7, window_bounds = array<i64: 8, 128>}]} {
    %c0_i32 = arith.constant 0 : i32
    %0 = arith.cmpi eq, %arg0, %c0_i32 : i32
    %1 = arith.extui %0 : i1 to i32
    %c0_i32_0 = arith.constant 0 : i32
    %2 = arith.cmpi ne, %1, %c0_i32_0 : i32
    scf.if %2 {
      %cst_21 = arith.constant 0.000000e+00 : f32
      %44 = vector.broadcast %cst_21 : f32 to vector<16x128xf32>
      %c0_22 = arith.constant 0 : index
      %c0_23 = arith.constant 0 : index
      %45 = vector.load %arg9[%c0_22, %c0_23] : memref<16x128xf32, #tpu.memory_space<vmem>>, vector<16x128xf32>
      tpu.vector_store %arg9[%c0_22, %c0_23], %44 {strides = array<i32>} : memref<16x128xf32, #tpu.memory_space<vmem>>, vector<16x128xf32>,
    } else {
    }
    %c0 = arith.constant 0 : index
    %c0_1 = arith.constant 0 : index
    %3 = vector.load %arg1[%c0, %c0_1] : memref<16x64xbf16, #tpu.memory_space<vmem>>, vector<16x64xbf16>
    %c0_2 = arith.constant 0 : index
    %c0_3 = arith.constant 0 : index
    %4 = vector.load %arg2[%c0_2, %c0_3] : memref<64x128xbf16, #tpu.memory_space<vmem>>, vector<64x128xbf16>
    %cst = arith.constant dense<0.000000e+00> : vector<16x128xf32>
    %5 = tpu.matmul %3, %4, %cst {dimension_numbers = #tpu.dot_dimension_numbers<[1], [0], [0], [1], [0, 0, 1, 1], [], []>} : vector<16x64xbf16>, vector<64x128xbf16>, vector<16x128xf32> -> vector<16x128xf32>
    %cst_4 = arith.constant dense<0.000000e+00> : vector<128xf32>
    %6 = vector.multi_reduction <add>, %5, %cst_4 [0] : vector<16x128xf32> to vector<128xf32>
    %7 = vector.shape_cast %6 : vector<128xf32> to vector<1x128xf32>
    %cst_5 = arith.constant 6.250000e-02 : f32
    %8 = vector.broadcast %cst_5 : f32 to vector<1x128xf32>
    %9 = arith.mulf %7, %8 : vector<1x128xf32>
    %10 = arith.mulf %5, %5 : vector<16x128xf32>
    %cst_6 = arith.constant dense<0.000000e+00> : vector<128xf32>
    %11 = vector.multi_reduction <add>, %10, %cst_6 [0] : vector<16x128xf32> to vector<128xf32>
    %12 = vector.shape_cast %11 : vector<128xf32> to vector<1x128xf32>
    %cst_7 = arith.constant 6.250000e-02 : f32
    %13 = vector.broadcast %cst_7 : f32 to vector<1x128xf32>
    %14 = arith.mulf %12, %13 : vector<1x128xf32>
    %15 = arith.mulf %9, %9 : vector<1x128xf32>
    %16 = arith.subf %14, %15 : vector<1x128xf32>
    %cst_8 = arith.constant 0.000000e+00 : f32
    %17 = vector.broadcast %cst_8 : f32 to vector<1x128xf32>
    %18 = arith.maximumf %16, %17 : vector<1x128xf32>
    %cst_9 = arith.constant 9.99999974E-6 : f32
    %19 = vector.broadcast %cst_9 : f32 to vector<1x128xf32>
    %20 = arith.addf %18, %19 : vector<1x128xf32>
    %21 = math.rsqrt %20 : vector<1x128xf32>
    %22 = arith.index_cast %arg0 : i32 to index
    %c0_10 = arith.constant 0 : index
    %23 = vector.load %arg3[%22, %c0_10] : memref<2x128xf32, #tpu.memory_space<vmem>>, vector<1x128xf32>
    %24 = arith.index_cast %arg0 : i32 to index
    %c0_11 = arith.constant 0 : index
    %25 = vector.load %arg4[%24, %c0_11] : memref<2x128xf32, #tpu.memory_space<vmem>>, vector<1x128xf32>
    %26 = arith.mulf %23, %21 : vector<1x128xf32>
    %27 = arith.mulf %9, %26 : vector<1x128xf32>
    %28 = arith.subf %25, %27 : vector<1x128xf32>
    %29 = vector.broadcast %26 : vector<1x128xf32> to vector<16x128xf32>
    %30 = arith.mulf %5, %29 : vector<16x128xf32>
    %31 = vector.broadcast %28 : vector<1x128xf32> to vector<16x128xf32>
    %32 = arith.addf %30, %31 : vector<16x128xf32>
    %cst_12 = arith.constant 0.000000e+00 : f32
    %33 = vector.broadcast %cst_12 : f32 to vector<16x128xf32>
    %34 = arith.maximumf %32, %33 : vector<16x128xf32>
    %35 = arith.truncf %34 : vector<16x128xf32> to vector<16x128xbf16>
    %c0_13 = arith.constant 0 : index
    %c0_14 = arith.constant 0 : index
    %36 = vector.load %arg9[%c0_13, %c0_14] : memref<16x128xf32, #tpu.memory_space<vmem>>, vector<16x128xf32>
    %c0_15 = arith.constant 0 : index
    %c0_16 = arith.constant 0 : index
    %37 = vector.load %arg5[%c0_15, %c0_16] : memref<128x128xbf16, #tpu.memory_space<vmem>>, vector<128x128xbf16>
    %cst_17 = arith.constant dense<0.000000e+00> : vector<16x128xf32>
    %38 = tpu.matmul %35, %37, %cst_17 {dimension_numbers = #tpu.dot_dimension_numbers<[1], [0], [0], [1], [0, 0, 1, 1], [], []>} : vector<16x128xbf16>, vector<128x128xbf16>, vector<16x128xf32> -> vector<16x128xf32>
    %39 = arith.addf %36, %38 : vector<16x128xf32>
    %c0_18 = arith.constant 0 : index
    %c0_19 = arith.constant 0 : index
    %40 = vector.load %arg9[%c0_18, %c0_19] : memref<16x128xf32, #tpu.memory_space<vmem>>, vector<16x128xf32>
    tpu.vector_store %arg9[%c0_18, %c0_19], %39 {strides = array<i32>} : memref<16x128xf32, #tpu.memory_space<vmem>>, vector<16x128xf32>,
    %c1_i32 = arith.constant 1 : i32
    %41 = arith.cmpi eq, %arg0, %c1_i32 : i32
    %42 = arith.extui %41 : i1 to i32
    %c0_i32_20 = arith.constant 0 : i32
    %43 = arith.cmpi ne, %42, %c0_i32_20 : i32
    scf.if %43 {
      %c0_21 = arith.constant 0 : index
      %c0_22 = arith.constant 0 : index
      %44 = vector.load %arg9[%c0_21, %c0_22] : memref<16x128xf32, #tpu.memory_space<vmem>>, vector<16x128xf32>
      %c0_23 = arith.constant 0 : index
      %c0_24 = arith.constant 0 : index
      %45 = vector.load %arg6[%c0_23, %c0_24] : memref<1x128xf32, #tpu.memory_space<vmem>>, vector<1x128xf32>
      %46 = vector.broadcast %45 : vector<1x128xf32> to vector<16x128xf32>
      %47 = arith.addf %44, %46 : vector<16x128xf32>
      %48 = vector.extract_strided_slice %47 {offsets = [0, 0], sizes = [8, 128], strides = [1, 1]} : vector<16x128xf32> to vector<8x128xf32>
      %c0_25 = arith.constant 0 : index
      %c0_26 = arith.constant 0 : index
      %49 = vector.load %arg7[%c0_25, %c0_26] : memref<8x128xf32, #tpu.memory_space<vmem>>, vector<8x128xf32>
      tpu.vector_store %arg7[%c0_25, %c0_26], %48 {strides = array<i32>} : memref<8x128xf32, #tpu.memory_space<vmem>>, vector<8x128xf32>,
      %50 = vector.extract_strided_slice %47 {offsets = [8, 0], sizes = [8, 128], strides = [1, 1]} : vector<16x128xf32> to vector<8x128xf32>
      %c0_27 = arith.constant 0 : index
      %c0_28 = arith.constant 0 : index
      %51 = vector.load %arg8[%c0_27, %c0_28] : memref<8x128xf32, #tpu.memory_space<vmem>>, vector<8x128xf32>
      tpu.vector_store %arg8[%c0_27, %c0_28], %50 {strides = array<i32>} : memref<8x128xf32, #tpu.memory_space<vmem>>, vector<8x128xf32>,
    } else {
    }
    return
  }
  func.func @transform_0(%arg0: i32) -> (i32, i32) {
    %c0_i32 = arith.constant 0 : i32
    %c0_i32_0 = arith.constant 0 : i32
    %c0_i32_1 = arith.constant 0 : i32
    return %c0_i32, %c0_i32_0 : i32, i32
  }
  func.func @transform_1(%arg0: i32) -> (i32, i32) {
    %c0_i32 = arith.constant 0 : i32
    %c0_i32_0 = arith.constant 0 : i32
    return %c0_i32, %arg0 : i32, i32
  }
  func.func @transform_2(%arg0: i32) -> (i32, i32) {
    %c0_i32 = arith.constant 0 : i32
    %c0_i32_0 = arith.constant 0 : i32
    %c0_i32_1 = arith.constant 0 : i32
    return %c0_i32, %c0_i32_0 : i32, i32
  }
  func.func @transform_3(%arg0: i32) -> (i32, i32) {
    %c0_i32 = arith.constant 0 : i32
    %c0_i32_0 = arith.constant 0 : i32
    %c0_i32_1 = arith.constant 0 : i32
    return %c0_i32, %c0_i32_0 : i32, i32
  }
  func.func @transform_4(%arg0: i32) -> (i32, i32) {
    %c0_i32 = arith.constant 0 : i32
    %c0_i32_0 = arith.constant 0 : i32
    return %arg0, %c0_i32 : i32, i32
  }
  func.func @transform_5(%arg0: i32) -> (i32, i32) {
    %c0_i32 = arith.constant 0 : i32
    %c0_i32_0 = arith.constant 0 : i32
    %c0_i32_1 = arith.constant 0 : i32
    return %c0_i32, %c0_i32_0 : i32, i32
  }
  func.func @transform_6(%arg0: i32) -> (i32, i32) {
    %c0_i32 = arith.constant 0 : i32
    %c0_i32_0 = arith.constant 0 : i32
    %c0_i32_1 = arith.constant 0 : i32
    return %c0_i32, %c0_i32_0 : i32, i32
  }
  func.func @transform_7(%arg0: i32) -> (i32, i32) {
    %c0_i32 = arith.constant 0 : i32
    %c0_i32_0 = arith.constant 0 : i32
    %c0_i32_1 = arith.constant 0 : i32
    return %c0_i32, %c0_i32_0 : i32, i32
  }
}

</mosaic_0001>

<bundles_post_ra>
// kernel: tpu_custom_call.1
= control target key start
LH: loop header
LB: loop body
LE: loop exit
PB: predicated region body
PF: predicated region fallthrough
CT: control target
= control target key end

     0   :  { %13 = vsyncpa [#allocation4], 0  ;;  %s1381_s0 = inlined_call_operand.hbm [shape: bf16[16,64], index: 0, kind: input, shape index: {}]   ;;  %s1382_s1 = inlined_call_operand.hbm [shape: bf16[64,256], index: 1, kind: input, shape index: {}]   ;;  %s1383_s2 = inlined_call_operand.vmem [shape: f32[2,128], index: 2, kind: input, shape index: {}]   ;;  %s1384_s3 = inlined_call_operand.vmem [shape: f32[2,128], index: 3, kind: input, shape index: {}]   ;;  %s1385_s4 = inlined_call_operand.hbm [shape: bf16[256,128], index: 4, kind: input, shape index: {}]   ;;  %s1386_s5 = inlined_call_operand.vmem [shape: f32[1,128], index: 5, kind: input, shape index: {}]   ;;  %s1387_s6 = inlined_call_operand.hbm [shape: f32[8,128], index: 6, kind: output, shape index: {0}]   ;;  %s1388_s7 = inlined_call_operand.hbm [shape: f32[8,128], index: 7, kind: output, shape index: {1}]  }
   0x1   :  { %14 = vsyncpa [#allocation7], 0 }
   0x2   :  { %16 = vsyncpa [#allocation7 + $0x1], 0 }
   0x3   :  { %17 = vsyncpa [#allocation5], 0 }
   0x4   :  { %18 = vsyncpa [#allocation11], 0  ;;  %s1125_s24 = smov 0   ;;  %s1127_s25 = smov 0  }
   0x5   :  { %s1129_s26 = smov 0   ;;  %s1131_s27 = smov 0  }
   0x6 LB: > { %s1146_s28 = sadd.s32 1, %s1072_s27   ;;  %s52_s29 = sadd.s32 1, %s1068_s26  ;;  %s1072_s27 = sphi %s1131_s27, %s1416_s27   ;;  %s1068_s26 = sphi %s1129_s26, %s1415_s26   ;;  %s1064_s25 = sphi %s1127_s25, %s1414_s25   ;;  %s1060_s24 = sphi %s1125_s24, %s1413_s24  }
   0x7   : > { %s49_s30 = ssub.s32 %s1072_s27, %s1146_s28  ;;  %p59_p0 = scmp.ne.s32.totalorder %s1068_s26, %s1064_s25 }
   0x8   : > { %p50_p1 = scmp.eq.s32.totalorder %s49_s30, 0  ;;  %p60_p2 = scmp.eq.s32.totalorder %s1072_s27, 0 }
   0x9   : > { %p824_p4 = scmp.lt.s32.totalorder %s1072_s27, 2  ;;  %s242_s9 = sand.u32 1, %s1072_s27  }
   0xa   : > { %s1155_s8 = scalar_select %p50_p1, %s1068_s26, %s52_s29  }
   0xb   : > { %p61_p3 = por %p60_p2, %p59_p0  ;;  %s244_s10 = sand.u32 1, %s1068_s26  }
   0xc   : > { %s717_s11 = sshll.u32 %s244_s10, 5  ;;  %s718_s12 = sshll.u32 %s1072_s27, 6 }
   0xd   : > { %s1166_s15 = scalar_lea.hbm %s1382_s1, %s718_s12  ;;  %s246_s16 = scalar_lea.vmem [#allocation6], %s717_s11 }
   0xe   : > { %s252_s17 = sshll.u32 %s246_s16, 4  ;;  %p1168_p5 = pnand %p824_p4, %p61_p3  ;;  %s1172_s17 = int_to_ptr.vmem [resolvable:$true] %s252_s17 }
   0xf   : > { %s1174_s19 = scalar_lea.sflag [#allocation7], %s242_s9  ;;  %s886_s20 = scalar_lea.hbm %s1166_s15, 512 }
  0x10   : > { %s1399_s18 = scalar_select %p1168_p5, 1, 0 }
  0x11   : > { %p887_p6 = scmp.ne.s32.totalorder %s1166_s15, %s886_s20  ;;  %p1394_p7 = pneg %p1168_p5 }
  0x12   : > { %s891_s23 = scalar_lea.hbm %s1382_s1, 1024  ;;  %p892_p10 = scmp.lt.u32.totalorder %s1166_s15, %s1382_s1 }
  0x13   : > { %p889_p8 = pnand %p1394_p7, %p887_p6  ;;  %p893_p11 = scmp.lt.u32.totalorder %s891_s23, %s886_s20 }
  0x14   : > { %p895_p13 = scmp.lt.u32.totalorder %s886_s20, %s1166_s15 }
  0x15   : > { %p890_p9 = pneg %p889_p8  ;;  %p894_p12 = por %p893_p11, %p892_p10 }
  0x17   : > { %p896_p0 = por %p895_p13, %p894_p12 }
  0x19   : > { %p897_p1 = pnand %p896_p0, %p890_p9 }
  0x1b   : > { %900 = shalt.err (!%p897_p1)
}
  0x1c   : > { %s901_s9 = scalar_lea.vmem %s1172_s17, 512  ;;  %s1074_s11 = smov [#allocation6]  }
  0x1d   : > { %p902_p2 = scmp.ne.s32.totalorder %s1172_s17, %s901_s9  ;;  %s906_s12 = sshll.u32 %s1074_s11, 4  ;;  %s907_s12 = int_to_ptr.vmem [resolvable:$false] %s906_s12 }
  0x1e   : > { %s908_s13 = scalar_lea.vmem %s907_s12, 1024  ;;  %p909_p6 = scmp.lt.s32.totalorder %s1172_s17, %s907_s12 }
  0x1f   : > { %p904_p3 = pnand %p902_p2, %p1394_p7  ;;  %p910_p8 = scmp.lt.s32.totalorder %s908_s13, %s901_s9 }
  0x21   : > { %p905_p4 = pneg %p904_p3  ;;  %p911_p10 = por %p910_p8, %p909_p6 }
  0x23   : > { %p912_p11 = pnand %p911_p10, %p905_p4 }
  0x25   : > { %915 = shalt.err (!%p912_p11)
}
  0x26   : > { %s1075_s14 = smov 128   ;;  %s1389_s16 = smov 64  }
  0x27   : > { %s1391_s20 = smov 4   ;;  %s1205_s21 = sadd.s32 4294967295, %s1072_s27  }
  0x28   : > { %819 = dma.hbm_to_vmem [thread:$0]  (!%p1168_p5), %s1166_s15, 512, %s1172_s17, %s1174_s19, %s1075_s14, %s1389_s16, %s1391_s20  }
  0x29   : > { %p65_p9 = scmp.ne.s32.totalorder %s1064_s25, %s1060_s24  ;;  %p1393_p12 = scmp.eq.s32.totalorder %s1205_s21, 0 }
  0x2a   : > { %p714_p13 = scmp.ge.s32.totalorder %s1072_s27, 1  ;;  %p207_p0 = scmp.lt.s32.totalorder %s1072_s27, 3 }
  0x2b   : > { %p1214_p1 = por %p1393_p12, %p65_p9  ;;  %s1078_s15 = smov [#allocation3]  }
  0x2c   : > { %p1219_p3 = pnand %p714_p13, %p207_p0  ;;  %s219_s17 = sshll.u32 %s1078_s15, 4  ;;  %s220_s17 = int_to_ptr.vmem [resolvable:$true] %s219_s17 }
  0x2d   : > { %s1400_s22 = scalar_select %p1214_p1, 1, 0 }
  0x2e   : > { %s1401_s23 = scalar_select %p1219_p3, 1, 0 }
  0x2f   : > { %s719_s29 = sshll.u32 %s244_s10, 6  ;;  %p812_p4 = pneg %p1219_p3 }
  0x30   : > { %s749_s24 = sshll.u32 %s1072_s27, 10  ;;  %s266_s13 = scalar_lea.vmem [#allocation8], %s719_s29 }
  0x31   : > { %p1230_p6 = pnand %p812_p4, %p1393_p12  ;;  %s1237_s12 = scalar_lea.hbm %s1385_s4, %s749_s24 }
  0x32   : > { %s273_s14 = sshll.u32 %s266_s13, 4  ;;  %s916_s27 = scalar_lea.hbm %s1381_s0, 128  ;;  %s1239_s14 = int_to_ptr.vmem [resolvable:$true] %s273_s14 }
  0x33   : > { %p917_p8 = scmp.ne.s32.totalorder %s1381_s0, %s916_s27  ;;  %p918_p10 = pneg %p1230_p6 }
  0x34   : > { %p923_p13 = scmp.lt.u32.totalorder %s916_s27, %s1381_s0 }
  0x35   : > { %p919_p11 = pnand %p918_p10, %p917_p8 }
  0x37   : > { %p920_p9 = pneg %p919_p11 }
  0x39   : > { %p925_p0 = pnand %p923_p13, %p920_p9 }
  0x3b   : > { %928 = shalt.err (!%p925_p0)
}
  0x3c   : > { %s929_s29 = scalar_lea.vmem %s220_s17, 128  ;;  %p937_p7 = scmp.lt.s32.totalorder %s220_s17, %s220_s17 }
  0x3d   : > { %p930_p4 = scmp.ne.s32.totalorder %s220_s17, %s929_s29  ;;  %p938_p1 = scmp.lt.s32.totalorder %s929_s29, %s929_s29 }
  0x3f   : > { %p932_p2 = pnand %p930_p4, %p918_p10  ;;  %p939_p3 = por %p938_p1, %p937_p7 }
  0x41   : > { %p933_p12 = pneg %p932_p2 }
  0x43   : > { %p940_p5 = pnand %p939_p3, %p933_p12 }
  0x45   : > { %943 = shalt.err (!%p940_p5)
}
  0x46   : > { %s1403_s16 = smov 4   ;;  %s1404_s20 = smov 64  }
  0x47   : > { %815 = dma.hbm_to_vmem [thread:$0]  (!%p1230_p6), %s1381_s0, 128, %s220_s17, [#allocation4], %s1404_s20, %s1404_s20, %s1403_s16  }
  0x48   : > { %s944_s10 = scalar_lea.hbm %s1237_s12, 1024  ;;  %p1405_p8 = scmp.ne.s32.totalorder %s1399_s18, 0 }
  0x49   : > { %p945_p2 = scmp.ne.s32.totalorder %s1237_s12, %s944_s10  ;;  %s949_s27 = scalar_lea.hbm %s1385_s4, 2048 }
  0x4a   : > { %p1406_p7 = pneg %p1405_p8  ;;  %p950_p1 = scmp.lt.u32.totalorder %s1237_s12, %s1385_s4 }
  0x4b   : > { %p951_p3 = scmp.lt.u32.totalorder %s949_s27, %s944_s10  ;;  %p953_p11 = scmp.lt.u32.totalorder %s944_s10, %s1237_s12 }
  0x4c   : > { %p947_p12 = pnand %p945_p2, %p1406_p7 }
  0x4d   : > { %p952_p10 = por %p951_p3, %p950_p1 }
  0x4e   : > { %p948_p5 = pneg %p947_p12 }
  0x4f   : > { %p954_p9 = por %p953_p11, %p952_p10 }
  0x51   : > { %p955_p13 = pnand %p954_p9, %p948_p5 }
  0x53   : > { %958 = shalt.err (!%p955_p13)
}
  0x54   : > { %s959_s17 = scalar_lea.vmem %s1239_s14, 1024  ;;  %p1407_p0 = pmov %p1406_p7 }
  0x55   : > { %p960_p6 = scmp.ne.s32.totalorder %s1239_s14, %s959_s17  ;;  %s1079_s29 = smov [#allocation8]  }
  0x56   : > { %s964_s24 = sshll.u32 %s1079_s29, 4  ;;  %s965_s24 = int_to_ptr.vmem [resolvable:$false] %s964_s24 }
  0x57   : > { %p962_p4 = pnand %p960_p6, %p1407_p0  ;;  %s966_s13 = scalar_lea.vmem %s965_s24, 2048 }
  0x58   : > { %p967_p7 = scmp.lt.s32.totalorder %s1239_s14, %s965_s24  ;;  %p968_p12 = scmp.lt.s32.totalorder %s966_s13, %s959_s17 }
  0x59   : > { %p963_p2 = pneg %p962_p4 }
  0x5a   : > { %p969_p1 = por %p968_p12, %p967_p7 }
  0x5c   : > { %p970_p3 = pnand %p969_p1, %p963_p2 }
  0x5e   : > { %973 = shalt.err (!%p970_p3)
}
  0x5f   : > { %822 = dma.hbm_to_vmem [thread:$0]  (!%p1405_p8), %s1237_s12, 1024, %s1239_s14, %s1174_s19, %s1404_s20, %s1404_s20, %s1403_s16  }
  0x60   : > { %p1408_p5 = scmp.ne.s32.totalorder %s1401_s23, 0 }
  0x61   : > { %p1409_p10 = scmp.eq.s32.totalorder (!%p1408_p5), %s1205_s21, 0 }
  0x62   : > { %285 = sbr.rel (%p1408_p5) target bundleno = 675 (0x2a3), region = 44 }
  0x69   : > { %1043 = dma.done.wait (%p1409_p10), [#allocation4], 128   ;;  %p1410_p11 = pmov %p1409_p10 }
  0x6a   : > { %s291_s18 = sand.u32 1, %s1205_s21   ;;  %s293_s10 = sand.u32 1, %s1064_s25  }
  0x6b   : > { %1045 = vsyncadd (%p1410_p11), [#allocation4], 4294967168  ;;  %s724_s15 = sshll.u32 %s293_s10, 5  ;;  %s292_s30 = scalar_lea.sflag [#allocation7], %s291_s18 }
  0x6c   : > { %s295_s27 = scalar_lea.vmem [#allocation6], %s724_s15  ;;  %p1411_p9 = scmp.ne.s32.totalorder %s1400_s22, 0 }
  0x6e   : > { %1047 = dma.done.wait (%p1411_p9), %s292_s30, 1536  }
  0x6f   : > { %1049 = vsyncadd (%p1411_p9), %s292_s30, 4294965760  ;;  %s725_s19 = sshll.u32 %s293_s10, 6  ;;  %p1412_p8 = scmp.ne.s32.totalorder %s1205_s21, 0 }
  0x70   : > { %s1299_s23 = scalar_lea.vmem [#allocation8], %s725_s19  ;;  %v1080_v0 = vmov (!%p1412_p8), 0.0  }
  0x71   : > { %340 = sbr.rel (%p1412_p8) target bundleno = 120 (0x78), region = 60  ;;  %341 = vst [vmem:[#allocation2] sm:$0xff] (!%p1412_p8), %v1080_v0  ;;  %342 = vst [vmem:[#allocation2 + $0x8] sm:$0xff] (!%p1412_p8), %v1080_v0 }
  0x78 PF: > { %v871_v1 = vld [vmem:[%s295_s27] sm:$0xff]   ;;  %v1081_v2 = vmov 0.0   ;;  %v872_v3 = vld [vmem:[%s295_s27 + $0x8] sm:$0xff]   ;;  %vm1082_vm0 = vmmov 0   ;;  %v873_v4 = vld [vmem:[%s295_s27 + $0x10] sm:$0xff]   ;;  %vm382_vm1 = vcmask 523264   ;;  %v457_v41 = vlaneseq  ;;  %s450_s14 = scalar_lea.vmem %s1383_s2, %s1205_s21  ;;  %s452_s9 = scalar_lea.vmem %s1384_s3, %s1205_s21 }
  0x79   : > { %764 = vmatprep.subr.bf16.mxu0 %v1081_v2  ;;  %776 = vmatprep.subr.bf16.mxu1 %v1081_v2  ;;  %v874_v5 = vld [vmem:[%s295_s27 + $0x18] sm:$0xff]   ;;  %v876_v7 = vld [vmem:[%s1299_s23] sm:$0xff]   ;;  %v877_v8 = vld [vmem:[%s1299_s23 + $0x8] sm:$0xff]   ;;  %p741_p13 = scmp.ne.s32.totalorder %s1205_s21, 1 }
  0x7a   : > { %765 = vmatpush3.bf16.msra.mxu0 %v871_v1  ;;  %772 = vmatprep.mubr.msk.bf16.mxu0 %vm1082_vm0, %v1081_v2  ;;  %v875_v6 = vld [vmem:[#allocation3] sm:$0xff]   ;;  %v878_v9 = vld [vmem:[%s1299_s23 + $0x10] sm:$0xff]   ;;  %v880_v11 = vld [vmem:[%s1299_s23 + $0x20] sm:$0xff]   ;;  %v458_v42 = vshrl.u32 %v457_v41, 7 }
  0x7b   : > { %766 = vmatprep.subr.bf16.mxu0 %v1081_v2  ;;  %792 = vmatprep.mubr.msk.bf16.mxu1 %vm1082_vm0, %v1081_v2  ;;  %v879_v10 = vld [vmem:[%s1299_s23 + $0x18] sm:$0xff]   ;;  %v881_v12 = vld [vmem:[%s1299_s23 + $0x28] sm:$0xff]   ;;  %v882_v13 = vld [vmem:[%s1299_s23 + $0x30] sm:$0xff]  }
  0x7c   : > { %777 = vmatpush3.bf16.msra.mxu1 %v876_v7  ;;  %v883_v14 = vld [vmem:[%s1299_s23 + $0x38] sm:$0xff]   ;;  %v451_v43 = vld [vmem:[%s450_s14] sm:$0x1]  ;;  %v459_v44 = vsub.s32 0, %v458_v42  ;;  %v473_v61 = vld [vmem:[#allocation2 + $0x8] sm:$0xff] }
  0x7d   : > { %778 = vmatprep.subr.bf16.mxu1 %v1081_v2  ;;  %v453_v47 = vld [vmem:[%s452_s9] sm:$0x1] }
  0x7e   : > { %767 = vmatpush3.bf16.msra.mxu0 %v872_v3  ;;  %v472_v59 = vld [vmem:[#allocation2] sm:$0xff] }
  0x7f   : > { %768 = vmatprep.subr.bf16.mxu0 %v1081_v2 }
  0x80   : > { %779 = vmatpush3.bf16.msra.mxu1 %v877_v8 }
  0x81   : > { %780 = vmatprep.subr.bf16.mxu1 %v1081_v2 }
  0x82   : > { %769 = vmatpush3.bf16.msra.mxu0 %v873_v4  ;;  %v742_v4 = vld [vmem:[%s1386_s5] ss:$0 sm:$0xff] (!%p741_p13) }
  0x83   : > { %770 = vmatprep.subr.bf16.mxu0 %v1081_v2 }
  0x84   : > { %781 = vmatpush3.bf16.msra.mxu1 %v878_v9 }
  0x85   : > { %782 = vmatprep.subr.bf16.mxu1 %v1081_v2 }
  0x86   : > { %771 = vmatpush3.bf16.msra.mxu0 %v874_v5 }
  0x88   : > { %783 = vmatpush3.bf16.msra.mxu1 %v879_v10 }
  0x89   : > { %773 = vmatmul.mubr.msk.bf16.vlgmr.msra.gmra.mrb[0].mxu0 %vm382_vm1, %v875_v6  ;;  %784 = vmatprep.subr.bf16.mxu1 %v1081_v2 }
  0x8c   : > { %785 = vmatpush3.bf16.msra.mxu1 %v880_v11 }
  0x8d   : > { %786 = vmatprep.subr.bf16.mxu1 %v1081_v2 }
  0x90   : > { %787 = vmatpush3.bf16.msra.mxu1 %v881_v12 }
  0x91   : > { %788 = vmatprep.subr.bf16.mxu1 %v1081_v2 }
  0x94   : > { %789 = vmatpush3.bf16.msra.mxu1 %v882_v13 }
  0x95   : > { %790 = vmatprep.subr.bf16.mxu1 %v1081_v2 }
  0x98   : > { %791 = vmatpush3.bf16.msra.mxu1 %v883_v14 }
 0x15c   : > { %v420_v15 = vpop.f32.mrb[0].mxu0 }
 0x15d   : > { %v774_v16 = vpop.f32.mrb[1].mxu0  ;;  %v435_v18 = vmul.f32 %v420_v15, %v420_v15 }
 0x15e   : > { %v423_v17 = vpop.f32.mrb[2].mxu0 }
 0x15f   : > { %v427_v19 = vadd.f32 %v423_v17, %v420_v15  ;;  %v436_v20 = vmul.f32 %v423_v17, %v423_v17  ;;  %v775_v21 = vpop.f32.mrb[3].mxu0 }
 0x161   : > { %v428_v22 = vrot.slane %v427_v19, 4  ;;  %v437_v23 = vadd.f32 %v436_v20, %v435_v18 }
 0x163   : > { %v429_v24 = vadd.f32 %v428_v22, %v427_v19  ;;  %v438_v25 = vrot.slane %v437_v23, 4 }
 0x165   : > { %v430_v26 = vrot.slane %v429_v24, 2  ;;  %v439_v27 = vadd.f32 %v438_v25, %v437_v23 }
 0x167   : > { %v431_v28 = vadd.f32 %v430_v26, %v429_v24  ;;  %v440_v29 = vrot.slane %v439_v27, 2 }
 0x169   : > { %v432_v30 = vrot.slane %v431_v28, 1  ;;  %v441_v31 = vadd.f32 %v440_v29, %v439_v27 }
 0x16b   : > { %v433_v32 = vadd.f32 %v432_v30, %v431_v28  ;;  %v442_v33 = vrot.slane %v441_v31, 1 }
 0x16d   : > { %v434_v34 = vmul.f32 0.0625, %v433_v32  ;;  %v443_v35 = vadd.f32 %v442_v33, %v441_v31 }
 0x16f   : > { %v444_v36 = vmul.f32 0.0625, %v443_v35  ;;  %v445_v37 = vmul.f32 %v434_v34, %v434_v34 }
 0x171   : > { %v446_v38 = vsub.f32 %v444_v36, %v445_v37 }
 0x173   : > { %v447_v39 = vmax.f32 %v446_v38, 0.0 }
 0x175   : > { %v448_v40 = vadd.f32 1e-05, %v447_v39 }
 0x177   : > { %884 = vrsqrt.f32 %v448_v40 }
 0x181   : > { %v885_v45 = vpop.eup %884 }
 0x182   : > { %v454_v46 = vmul.f32 %v885_v45, %v451_v43 }
 0x184   : > { %v455_v48 = vmul.f32 %v454_v46, %v434_v34  ;;  %v460_v49 = vrot.slane %v454_v46, %v459_v44 }
 0x186   : > { %v456_v50 = vsub.f32 %v453_v47, %v455_v48  ;;  %v461_v51 = vmul.f32 %v460_v49, %v420_v15  ;;  %v462_v52 = vmul.f32 %v460_v49, %v423_v17 }
 0x188   : > { %v466_v53 = vrot.slane %v456_v50, %v459_v44 }
 0x18a   : > { %v468_v54 = vadd.f32 %v466_v53, %v462_v52  ;;  %v467_v55 = vadd.f32 %v466_v53, %v461_v51 }
 0x18c   : > { %v469_v56 = vmax.f32 %v467_v55, 0.0  ;;  %v470_v57 = vmax.f32 %v468_v54, 0.0 }
 0x18e   : > { %v471_v58 = vpack.c.bf16 %v470_v57, %v469_v56 }
 0x190   : > { %793 = vmatmul.mubr.bf16.vlgmr.msra.gmra.mrb[0].mxu1 %v471_v58 }
 0x262   : > { %586 = sbr.rel (%p741_p13) target bundleno = 627 (0x273), region = 64 }
 0x263   : > { %v572_v60 = vpop.f32.mrb[0].mxu1 }
 0x264   : > { %v579_v62 = vadd.f32 %v572_v60, %v472_v59  ;;  %v794_v63 = vpop.f32.mrb[1].mxu1 }
 0x265   : > { %v575_v0 = vpop.f32.mrb[2].mxu1 }
 0x266   : > { %581 = vst [vmem:[#allocation2] sm:$0xff] %v579_v62  ;;  %v580_v1 = vadd.f32 %v575_v0, %v473_v61  ;;  %v795_v2 = vpop.f32.mrb[3].mxu1 }
 0x268   : > { %582 = vst [vmem:[#allocation2 + $0x8] sm:$0xff] %v580_v1 }
 0x26d   : > { %v587_v3 = vld [vmem:[#allocation2] sm:$0xff] }
 0x26e   : > { %v596_v6 = vadd.f32 %v742_v4, %v587_v3 }
 0x26f   : > { %v588_v5 = vld [vmem:[#allocation2 + $0x8] sm:$0xff] }
 0x270   : > { %v597_v7 = vadd.f32 %v742_v4, %v588_v5  ;;  %598 = vst [vmem:[#allocation9] sm:$0xff] %v596_v6 }
 0x272   : > { %599 = vst [vmem:[#allocation10] sm:$0xff] %v597_v7 }
 0x273 PF: > { %p826_p6 = scmp.eq.s32.totalorder %s1205_s21, 1  ;;  %s1083_s29 = smov [#allocation9]  }
 0x274   : > { %s607_s24 = sshll.u32 %s1083_s29, 4  ;;  %s1084_s13 = smov [#allocation10]   ;;  %s608_s24 = int_to_ptr.vmem [resolvable:$true] %s607_s24 }
 0x275   : > { %s618_s18 = sshll.u32 %s1084_s13, 4  ;;  %s974_s10 = scalar_lea.vmem %s608_s24, 128  ;;  %s619_s18 = int_to_ptr.vmem [resolvable:$true] %s618_s18 }
 0x276   : > { %p975_p0 = scmp.ne.s32.totalorder %s608_s24, %s974_s10  ;;  %p981_p7 = scmp.lt.s32.totalorder %s608_s24, %s608_s24 }
 0x277   : > { %p982_p12 = scmp.lt.s32.totalorder %s974_s10, %s974_s10 }
 0x278   : > { %p976_p4 = pnand %p975_p0, %p826_p6 }
 0x279   : > { %p983_p1 = por %p982_p12, %p981_p7 }
 0x27a   : > { %p977_p2 = pneg %p976_p4 }
 0x27c   : > { %p984_p3 = pnand %p983_p1, %p977_p2 }
 0x27e   : > { %987 = shalt.err (!%p984_p3)
}
 0x27f   : > { %s988_s27 = scalar_lea.hbm %s1387_s6, 128 }
 0x280   : > { %p989_p5 = scmp.ne.s32.totalorder %s1387_s6, %s988_s27  ;;  %p994_p9 = scmp.lt.u32.totalorder %s988_s27, %s1387_s6 }
 0x282   : > { %p990_p10 = pnand %p989_p5, %p826_p6 }
 0x284   : > { %p991_p11 = pneg %p990_p10 }
 0x286   : > { %p996_p8 = pnand %p994_p9, %p991_p11 }
 0x288   : > { %999 = shalt.err (!%p996_p8)
}
 0x289   : > { %805 = dma.vmem_to_hbm [thread:$0]  (%p826_p6), %s608_s24, 128, %s1387_s6, [#allocation5]  }
 0x28a   : > { %s1000_s20 = scalar_lea.vmem %s619_s18, 128  ;;  %p1007_p2 = scmp.lt.s32.totalorder %s619_s18, %s619_s18 }
 0x28b   : > { %p1001_p13 = scmp.ne.s32.totalorder %s619_s18, %s1000_s20  ;;  %p1008_p7 = scmp.lt.s32.totalorder %s1000_s20, %s1000_s20 }
 0x28d   : > { %p1002_p0 = pnand %p1001_p13, %p826_p6  ;;  %p1009_p12 = por %p1008_p7, %p1007_p2 }
 0x28f   : > { %p1003_p4 = pneg %p1002_p0 }
 0x291   : > { %p1010_p1 = pnand %p1009_p12, %p1003_p4 }
 0x293   : > { %1013 = shalt.err (!%p1010_p1)
}
 0x294   : > { %s1014_s17 = scalar_lea.hbm %s1388_s7, 128 }
 0x295   : > { %p1015_p3 = scmp.ne.s32.totalorder %s1388_s7, %s1014_s17  ;;  %p1020_p11 = scmp.lt.u32.totalorder %s1014_s17, %s1388_s7 }
 0x297   : > { %p1016_p5 = pnand %p1015_p3, %p826_p6 }
 0x299   : > { %p1017_p10 = pneg %p1016_p5 }
 0x29b   : > { %p1022_p9 = pnand %p1020_p11, %p1017_p10 }
 0x29d   : > { %1025 = shalt.err (!%p1022_p9)
}
 0x29e   : > { %807 = dma.vmem_to_hbm [thread:$0]  (%p826_p6), %s619_s18, 128, %s1388_s7, [#allocation11]  }
 0x29f   : > { %1051 = dma.done.wait (%p826_p6), [#allocation5], 128  }
 0x2a0   : > { %1053 = vsyncadd (%p826_p6), [#allocation5], 4294967168 }
 0x2a1   : > { %1055 = dma.done.wait (%p826_p6), [#allocation11], 128  }
 0x2a2   : > { %1057 = vsyncadd (%p826_p6), [#allocation11], 4294967168 }
 0x2a3 PF: > { %p21_p8 = scmp.ge.s32.totalorder %s1146_s28, 4   ;;  %s1413_s24 = smov %s1064_s25 }
 0x2a4   : > { %s1414_s25 = smov %s1068_s26  ;;  %s1415_s26 = smov %s1155_s8 }
 0x2a5   : > { %s1416_s27 = smov %s1146_s28  ;;  %23 = sbr.rel (!%p21_p8) target bundleno = 6 (0x6), region = 115 }
 0x2ac   :  { %635 = vsyncpa [#allocation4], 1 }
 0x2ad   :  { %637 = vsyncpa [#allocation4 + $0x1], 1 }
 0x2ae   :  { %638 = vsyncpa [#allocation7], 1 }
 0x2af   :  { %640 = vsyncpa [#allocation7 + $0x1], 1 }
 0x2b0   :  { %641 = vsyncpa [#allocation5], 1 }
 0x2b1   :  { %643 = vsyncpa [#allocation5 + $0x1], 1 }
 0x2b2   :  { %644 = vsyncpa [#allocation11], 1 }

// kernel: tpu_custom_call.1
= control target key start
LH: loop header
LB: loop body
LE: loop exit
PB: predicated region body
PF: predicated region fallthrough
CT: control target
= control target key end

     0   :  { %13 = vsyncpa [#allocation4], 0  ;;  %s1381_s0 = inlined_call_operand.hbm [shape: bf16[16,64], index: 0, kind: input, shape index: {}]   ;;  %s1382_s1 = inlined_call_operand.hbm [shape: bf16[64,256], index: 1, kind: input, shape index: {}]   ;;  %s1383_s2 = inlined_call_operand.vmem [shape: f32[2,128], index: 2, kind: input, shape index: {}]   ;;  %s1384_s3 = inlined_call_operand.vmem [shape: f32[2,128], index: 3, kind: input, shape index: {}]   ;;  %s1385_s4 = inlined_call_operand.hbm [shape: bf16[256,128], index: 4, kind: input, shape index: {}]   ;;  %s1386_s5 = inlined_call_operand.vmem [shape: f32[1,128], index: 5, kind: input, shape index: {}]   ;;  %s1387_s6 = inlined_call_operand.hbm [shape: f32[8,128], index: 6, kind: output, shape index: {0}]   ;;  %s1388_s7 = inlined_call_operand.hbm [shape: f32[8,128], index: 7, kind: output, shape index: {1}]  }
   0x1   :  { %14 = vsyncpa [#allocation7], 0 }
   0x2   :  { %16 = vsyncpa [#allocation7 + $0x1], 0 }
   0x3   :  { %17 = vsyncpa [#allocation5], 0 }
   0x4   :  { %18 = vsyncpa [#allocation11], 0  ;;  %s1125_s24 = smov 0   ;;  %s1127_s25 = smov 0  }
   0x5   :  { %s1129_s26 = smov 0   ;;  %s1131_s27 = smov 0  }
   0x6 LB: > { %s1146_s28 = sadd.s32 1, %s1072_s27   ;;  %s52_s29 = sadd.s32 1, %s1068_s26  ;;  %s1072_s27 = sphi %s1131_s27, %s1416_s27   ;;  %s1068_s26 = sphi %s1129_s26, %s1415_s26   ;;  %s1064_s25 = sphi %s1127_s25, %s1414_s25   ;;  %s1060_s24 = sphi %s1125_s24, %s1413_s24  }
   0x7   : > { %s49_s30 = ssub.s32 %s1072_s27, %s1146_s28  ;;  %p59_p0 = scmp.ne.s32.totalorder %s1068_s26, %s1064_s25 }
   0x8   : > { %p50_p1 = scmp.eq.s32.totalorder %s49_s30, 0  ;;  %p60_p2 = scmp.eq.s32.totalorder %s1072_s27, 0 }
   0x9   : > { %p824_p4 = scmp.lt.s32.totalorder %s1072_s27, 2  ;;  %s242_s9 = sand.u32 1, %s1072_s27  }
   0xa   : > { %s1155_s8 = scalar_select %p50_p1, %s1068_s26, %s52_s29  }
   0xb   : > { %p61_p3 = por %p60_p2, %p59_p0  ;;  %s244_s10 = sand.u32 1, %s1068_s26  }
   0xc   : > { %s717_s11 = sshll.u32 %s244_s10, 5  ;;  %s718_s12 = sshll.u32 %s1072_s27, 6 }
   0xd   : > { %s1166_s15 = scalar_lea.hbm %s1382_s1, %s718_s12  ;;  %s246_s16 = scalar_lea.vmem [#allocation6], %s717_s11 }
   0xe   : > { %s252_s17 = sshll.u32 %s246_s16, 4  ;;  %p1168_p5 = pnand %p824_p4, %p61_p3  ;;  %s1172_s17 = int_to_ptr.vmem [resolvable:$true] %s252_s17 }
   0xf   : > { %s1174_s19 = scalar_lea.sflag [#allocation7], %s242_s9  ;;  %s886_s20 = scalar_lea.hbm %s1166_s15, 512 }
  0x10   : > { %s1399_s18 = scalar_select %p1168_p5, 1, 0 }
  0x11   : > { %p887_p6 = scmp.ne.s32.totalorder %s1166_s15, %s886_s20  ;;  %p1394_p7 = pneg %p1168_p5 }
  0x12   : > { %s891_s23 = scalar_lea.hbm %s1382_s1, 1024  ;;  %p892_p10 = scmp.lt.u32.totalorder %s1166_s15, %s1382_s1 }
  0x13   : > { %p889_p8 = pnand %p1394_p7, %p887_p6  ;;  %p893_p11 = scmp.lt.u32.totalorder %s891_s23, %s886_s20 }
  0x14   : > { %p895_p13 = scmp.lt.u32.totalorder %s886_s20, %s1166_s15 }
  0x15   : > { %p890_p9 = pneg %p889_p8  ;;  %p894_p12 = por %p893_p11, %p892_p10 }
  0x17   : > { %p896_p0 = por %p895_p13, %p894_p12 }
  0x19   : > { %p897_p1 = pnand %p896_p0, %p890_p9 }
  0x1b   : > { %900 = shalt.err (!%p897_p1)
}
  0x1c   : > { %s901_s9 = scalar_lea.vmem %s1172_s17, 512  ;;  %s1074_s11 = smov [#allocation6]  }
  0x1d   : > { %p902_p2 = scmp.ne.s32.totalorder %s1172_s17, %s901_s9  ;;  %s906_s12 = sshll.u32 %s1074_s11, 4  ;;  %s907_s12 = int_to_ptr.vmem [resolvable:$false] %s906_s12 }
  0x1e   : > { %s908_s13 = scalar_lea.vmem %s907_s12, 1024  ;;  %p909_p6 = scmp.lt.s32.totalorder %s1172_s17, %s907_s12 }
  0x1f   : > { %p904_p3 = pnand %p902_p2, %p1394_p7  ;;  %p910_p8 = scmp.lt.s32.totalorder %s908_s13, %s901_s9 }
  0x21   : > { %p905_p4 = pneg %p904_p3  ;;  %p911_p10 = por %p910_p8, %p909_p6 }
  0x23   : > { %p912_p11 = pnand %p911_p10, %p905_p4 }
  0x25   : > { %915 = shalt.err (!%p912_p11)
}
  0x26   : > { %s1075_s14 = smov 128   ;;  %s1389_s16 = smov 64  }
  0x27   : > { %s1391_s20 = smov 4   ;;  %s1205_s21 = sadd.s32 4294967295, %s1072_s27  }
  0x28   : > { %819 = dma.hbm_to_vmem [thread:$0]  (!%p1168_p5), %s1166_s15, 512, %s1172_s17, %s1174_s19, %s1075_s14, %s1389_s16, %s1391_s20  }
  0x29   : > { %p65_p9 = scmp.ne.s32.totalorder %s1064_s25, %s1060_s24  ;;  %p1393_p12 = scmp.eq.s32.totalorder %s1205_s21, 0 }
  0x2a   : > { %p714_p13 = scmp.ge.s32.totalorder %s1072_s27, 1  ;;  %p207_p0 = scmp.lt.s32.totalorder %s1072_s27, 3 }
  0x2b   : > { %p1214_p1 = por %p1393_p12, %p65_p9  ;;  %s1078_s15 = smov [#allocation3]  }
  0x2c   : > { %p1219_p3 = pnand %p714_p13, %p207_p0  ;;  %s219_s17 = sshll.u32 %s1078_s15, 4  ;;  %s220_s17 = int_to_ptr.vmem [resolvable:$true] %s219_s17 }
  0x2d   : > { %s1400_s22 = scalar_select %p1214_p1, 1, 0 }
  0x2e   : > { %s1401_s23 = scalar_select %p1219_p3, 1, 0 }
  0x2f   : > { %s719_s29 = sshll.u32 %s244_s10, 6  ;;  %p812_p4 = pneg %p1219_p3 }
  0x30   : > { %s749_s24 = sshll.u32 %s1072_s27, 10  ;;  %s266_s13 = scalar_lea.vmem [#allocation8], %s719_s29 }
  0x31   : > { %p1230_p6 = pnand %p812_p4, %p1393_p12  ;;  %s1237_s12 = scalar_lea.hbm %s1385_s4, %s749_s24 }
  0x32   : > { %s273_s14 = sshll.u32 %s266_s13, 4  ;;  %s916_s27 = scalar_lea.hbm %s1381_s0, 128  ;;  %s1239_s14 = int_to_ptr.vmem [resolvable:$true] %s273_s14 }
  0x33   : > { %p917_p8 = scmp.ne.s32.totalorder %s1381_s0, %s916_s27  ;;  %p918_p10 = pneg %p1230_p6 }
  0x34   : > { %p923_p13 = scmp.lt.u32.totalorder %s916_s27, %s1381_s0 }
  0x35   : > { %p919_p11 = pnand %p918_p10, %p917_p8 }
  0x37   : > { %p920_p9 = pneg %p919_p11 }
  0x39   : > { %p925_p0 = pnand %p923_p13, %p920_p9 }
  0x3b   : > { %928 = shalt.err (!%p925_p0)
}
  0x3c   : > { %s929_s29 = scalar_lea.vmem %s220_s17, 128  ;;  %p937_p7 = scmp.lt.s32.totalorder %s220_s17, %s220_s17 }
  0x3d   : > { %p930_p4 = scmp.ne.s32.totalorder %s220_s17, %s929_s29  ;;  %p938_p1 = scmp.lt.s32.totalorder %s929_s29, %s929_s29 }
  0x3f   : > { %p932_p2 = pnand %p930_p4, %p918_p10  ;;  %p939_p3 = por %p938_p1, %p937_p7 }
  0x41   : > { %p933_p12 = pneg %p932_p2 }
  0x43   : > { %p940_p5 = pnand %p939_p3, %p933_p12 }
  0x45   : > { %943 = shalt.err (!%p940_p5)
}
  0x46   : > { %s1403_s16 = smov 4   ;;  %s1404_s20 = smov 64  }
  0x47   : > { %815 = dma.hbm_to_vmem [thread:$0]  (!%p1230_p6), %s1381_s0, 128, %s220_s17, [#allocation4], %s1404_s20, %s1404_s20, %s1403_s16  }
  0x48   : > { %s944_s10 = scalar_lea.hbm %s1237_s12, 1024  ;;  %p1405_p8 = scmp.ne.s32.totalorder %s1399_s18, 0 }
  0x49   : > { %p945_p2 = scmp.ne.s32.totalorder %s1237_s12, %s944_s10  ;;  %s949_s27 = scalar_lea.hbm %s1385_s4, 2048 }
  0x4a   : > { %p1406_p7 = pneg %p1405_p8  ;;  %p950_p1 = scmp.lt.u32.totalorder %s1237_s12, %s1385_s4 }
  0x4b   : > { %p951_p3 = scmp.lt.u32.totalorder %s949_s27, %s944_s10  ;;  %p953_p11 = scmp.lt.u32.totalorder %s944_s10, %s1237_s12 }
  0x4c   : > { %p947_p12 = pnand %p945_p2, %p1406_p7 }
  0x4d   : > { %p952_p10 = por %p951_p3, %p950_p1 }
  0x4e   : > { %p948_p5 = pneg %p947_p12 }
  0x4f   : > { %p954_p9 = por %p953_p11, %p952_p10 }
  0x51   : > { %p955_p13 = pnand %p954_p9, %p948_p5 }
  0x53   : > { %958 = shalt.err (!%p955_p13)
}
  0x54   : > { %s959_s17 = scalar_lea.vmem %s1239_s14, 1024  ;;  %p1407_p0 = pmov %p1406_p7 }
  0x55   : > { %p960_p6 = scmp.ne.s32.totalorder %s1239_s14, %s959_s17  ;;  %s1079_s29 = smov [#allocation8]  }
  0x56   : > { %s964_s24 = sshll.u32 %s1079_s29, 4  ;;  %s965_s24 = int_to_ptr.vmem [resolvable:$false] %s964_s24 }
  0x57   : > { %p962_p4 = pnand %p960_p6, %p1407_p0  ;;  %s966_s13 = scalar_lea.vmem %s965_s24, 2048 }
  0x58   : > { %p967_p7 = scmp.lt.s32.totalorder %s1239_s14, %s965_s24  ;;  %p968_p12 = scmp.lt.s32.totalorder %s966_s13, %s959_s17 }
  0x59   : > { %p963_p2 = pneg %p962_p4 }
  0x5a   : > { %p969_p1 = por %p968_p12, %p967_p7 }
  0x5c   : > { %p970_p3 = pnand %p969_p1, %p963_p2 }
  0x5e   : > { %973 = shalt.err (!%p970_p3)
}
  0x5f   : > { %822 = dma.hbm_to_vmem [thread:$0]  (!%p1405_p8), %s1237_s12, 1024, %s1239_s14, %s1174_s19, %s1404_s20, %s1404_s20, %s1403_s16  }
  0x60   : > { %p1408_p5 = scmp.ne.s32.totalorder %s1401_s23, 0 }
  0x61   : > { %p1409_p10 = scmp.eq.s32.totalorder (!%p1408_p5), %s1205_s21, 0 }
  0x62   : > { %285 = sbr.rel (%p1408_p5) target bundleno = 675 (0x2a3), region = 44 }
  0x69   : > { %1043 = dma.done.wait (%p1409_p10), [#allocation4], 128   ;;  %p1410_p11 = pmov %p1409_p10 }
  0x6a   : > { %s291_s18 = sand.u32 1, %s1205_s21   ;;  %s293_s10 = sand.u32 1, %s1064_s25  }
  0x6b   : > { %1045 = vsyncadd (%p1410_p11), [#allocation4], 4294967168  ;;  %s724_s15 = sshll.u32 %s293_s10, 5  ;;  %s292_s30 = scalar_lea.sflag [#allocation7], %s291_s18 }
  0x6c   : > { %s295_s27 = scalar_lea.vmem [#allocation6], %s724_s15  ;;  %p1411_p9 = scmp.ne.s32.totalorder %s1400_s22, 0 }
  0x6e   : > { %1047 = dma.done.wait (%p1411_p9), %s292_s30, 1536  }
  0x6f   : > { %1049 = vsyncadd (%p1411_p9), %s292_s30, 4294965760  ;;  %s725_s19 = sshll.u32 %s293_s10, 6  ;;  %p1412_p8 = scmp.ne.s32.totalorder %s1205_s21, 0 }
  0x70   : > { %s1299_s23 = scalar_lea.vmem [#allocation8], %s725_s19  ;;  %v1080_v0 = vmov (!%p1412_p8), 0.0  }
  0x71   : > { %340 = sbr.rel (%p1412_p8) target bundleno = 120 (0x78), region = 60  ;;  %341 = vst [vmem:[#allocation2] sm:$0xff] (!%p1412_p8), %v1080_v0  ;;  %342 = vst [vmem:[#allocation2 + $0x8] sm:$0xff] (!%p1412_p8), %v1080_v0 }
  0x78 PF: > { %v871_v1 = vld [vmem:[%s295_s27] sm:$0xff]   ;;  %v1081_v2 = vmov 0.0   ;;  %v872_v3 = vld [vmem:[%s295_s27 + $0x8] sm:$0xff]   ;;  %vm1082_vm0 = vmmov 0   ;;  %v873_v4 = vld [vmem:[%s295_s27 + $0x10] sm:$0xff]   ;;  %vm382_vm1 = vcmask 523264   ;;  %v457_v41 = vlaneseq  ;;  %s450_s14 = scalar_lea.vmem %s1383_s2, %s1205_s21  ;;  %s452_s9 = scalar_lea.vmem %s1384_s3, %s1205_s21 }
  0x79   : > { %764 = vmatprep.subr.bf16.mxu0 %v1081_v2  ;;  %776 = vmatprep.subr.bf16.mxu1 %v1081_v2  ;;  %v874_v5 = vld [vmem:[%s295_s27 + $0x18] sm:$0xff]   ;;  %v876_v7 = vld [vmem:[%s1299_s23] sm:$0xff]   ;;  %v877_v8 = vld [vmem:[%s1299_s23 + $0x8] sm:$0xff]   ;;  %p741_p13 = scmp.ne.s32.totalorder %s1205_s21, 1 }
  0x7a   : > { %765 = vmatpush3.bf16.msra.mxu0 %v871_v1  ;;  %772 = vmatprep.mubr.msk.bf16.mxu0 %vm1082_vm0, %v1081_v2  ;;  %v875_v6 = vld [vmem:[#allocation3] sm:$0xff]   ;;  %v878_v9 = vld [vmem:[%s1299_s23 + $0x10] sm:$0xff]   ;;  %v880_v11 = vld [vmem:[%s1299_s23 + $0x20] sm:$0xff]   ;;  %v458_v42 = vshrl.u32 %v457_v41, 7 }
  0x7b   : > { %766 = vmatprep.subr.bf16.mxu0 %v1081_v2  ;;  %792 = vmatprep.mubr.msk.bf16.mxu1 %vm1082_vm0, %v1081_v2  ;;  %v879_v10 = vld [vmem:[%s1299_s23 + $0x18] sm:$0xff]   ;;  %v881_v12 = vld [vmem:[%s1299_s23 + $0x28] sm:$0xff]   ;;  %v882_v13 = vld [vmem:[%s1299_s23 + $0x30] sm:$0xff]  }
  0x7c   : > { %777 = vmatpush3.bf16.msra.mxu1 %v876_v7  ;;  %v883_v14 = vld [vmem:[%s1299_s23 + $0x38] sm:$0xff]   ;;  %v451_v43 = vld [vmem:[%s450_s14] sm:$0x1]  ;;  %v459_v44 = vsub.s32 0, %v458_v42  ;;  %v473_v61 = vld [vmem:[#allocation2 + $0x8] sm:$0xff] }
  0x7d   : > { %778 = vmatprep.subr.bf16.mxu1 %v1081_v2  ;;  %v453_v47 = vld [vmem:[%s452_s9] sm:$0x1] }
  0x7e   : > { %767 = vmatpush3.bf16.msra.mxu0 %v872_v3  ;;  %v472_v59 = vld [vmem:[#allocation2] sm:$0xff] }
  0x7f   : > { %768 = vmatprep.subr.bf16.mxu0 %v1081_v2 }
  0x80   : > { %779 = vmatpush3.bf16.msra.mxu1 %v877_v8 }
  0x81   : > { %780 = vmatprep.subr.bf16.mxu1 %v1081_v2 }
  0x82   : > { %769 = vmatpush3.bf16.msra.mxu0 %v873_v4  ;;  %v742_v4 = vld [vmem:[%s1386_s5] ss:$0 sm:$0xff] (!%p741_p13) }
  0x83   : > { %770 = vmatprep.subr.bf16.mxu0 %v1081_v2 }
  0x84   : > { %781 = vmatpush3.bf16.msra.mxu1 %v878_v9 }
  0x85   : > { %782 = vmatprep.subr.bf16.mxu1 %v1081_v2 }
  0x86   : > { %771 = vmatpush3.bf16.msra.mxu0 %v874_v5 }
  0x88   : > { %783 = vmatpush3.bf16.msra.mxu1 %v879_v10 }
  0x89   : > { %773 = vmatmul.mubr.msk.bf16.vlgmr.msra.gmra.mrb[0].mxu0 %vm382_vm1, %v875_v6  ;;  %784 = vmatprep.subr.bf16.mxu1 %v1081_v2 }
  0x8c   : > { %785 = vmatpush3.bf16.msra.mxu1 %v880_v11 }
  0x8d   : > { %786 = vmatprep.subr.bf16.mxu1 %v1081_v2 }
  0x90   : > { %787 = vmatpush3.bf16.msra.mxu1 %v881_v12 }
  0x91   : > { %788 = vmatprep.subr.bf16.mxu1 %v1081_v2 }
  0x94   : > { %789 = vmatpush3.bf16.msra.mxu1 %v882_v13 }
  0x95   : > { %790 = vmatprep.subr.bf16.mxu1 %v1081_v2 }
  0x98   : > { %791 = vmatpush3.bf16.msra.mxu1 %v883_v14 }
 0x15c   : > { %v420_v15 = vpop.f32.mrb[0].mxu0 }
 0x15d   : > { %v774_v16 = vpop.f32.mrb[1].mxu0  ;;  %v435_v18 = vmul.f32 %v420_v15, %v420_v15 }
 0x15e   : > { %v423_v17 = vpop.f32.mrb[2].mxu0 }
 0x15f   : > { %v427_v19 = vadd.f32 %v423_v17, %v420_v15  ;;  %v436_v20 = vmul.f32 %v423_v17, %v423_v17  ;;  %v775_v21 = vpop.f32.mrb[3].mxu0 }
 0x161   : > { %v428_v22 = vrot.slane %v427_v19, 4  ;;  %v437_v23 = vadd.f32 %v436_v20, %v435_v18 }
 0x163   : > { %v429_v24 = vadd.f32 %v428_v22, %v427_v19  ;;  %v438_v25 = vrot.slane %v437_v23, 4 }
 0x165   : > { %v430_v26 = vrot.slane %v429_v24, 2  ;;  %v439_v27 = vadd.f32 %v438_v25, %v437_v23 }
 0x167   : > { %v431_v28 = vadd.f32 %v430_v26, %v429_v24  ;;  %v440_v29 = vrot.slane %v439_v27, 2 }
 0x169   : > { %v432_v30 = vrot.slane %v431_v28, 1  ;;  %v441_v31 = vadd.f32 %v440_v29, %v439_v27 }
 0x16b   : > { %v433_v32 = vadd.f32 %v432_v30, %v431_v28  ;;  %v442_v33 = vrot.slane %v441_v31, 1 }
 0x16d   : > { %v434_v34 = vmul.f32 0.0625, %v433_v32  ;;  %v443_v35 = vadd.f32 %v442_v33, %v441_v31 }
 0x16f   : > { %v444_v36 = vmul.f32 0.0625, %v443_v35  ;;  %v445_v37 = vmul.f32 %v434_v34, %v434_v34 }
 0x171   : > { %v446_v38 = vsub.f32 %v444_v36, %v445_v37 }
 0x173   : > { %v447_v39 = vmax.f32 %v446_v38, 0.0 }
 0x175   : > { %v448_v40 = vadd.f32 1e-05, %v447_v39 }
 0x177   : > { %884 = vrsqrt.f32 %v448_v40 }
 0x181   : > { %v885_v45 = vpop.eup %884 }
 0x182   : > { %v454_v46 = vmul.f32 %v885_v45, %v451_v43 }
 0x184   : > { %v455_v48 = vmul.f32 %v454_v46, %v434_v34  ;;  %v460_v49 = vrot.slane %v454_v46, %v459_v44 }
 0x186   : > { %v456_v50 = vsub.f32 %v453_v47, %v455_v48  ;;  %v461_v51 = vmul.f32 %v460_v49, %v420_v15  ;;  %v462_v52 = vmul.f32 %v460_v49, %v423_v17 }
 0x188   : > { %v466_v53 = vrot.slane %v456_v50, %v459_v44 }
 0x18a   : > { %v468_v54 = vadd.f32 %v466_v53, %v462_v52  ;;  %v467_v55 = vadd.f32 %v466_v53, %v461_v51 }
 0x18c   : > { %v469_v56 = vmax.f32 %v467_v55, 0.0  ;;  %v470_v57 = vmax.f32 %v468_v54, 0.0 }
 0x18e   : > { %v471_v58 = vpack.c.bf16 %v470_v57, %v469_v56 }
 0x190   : > { %793 = vmatmul.mubr.bf16.vlgmr.msra.gmra.mrb[0].mxu1 %v471_v58 }
 0x262   : > { %586 = sbr.rel (%p741_p13) target bundleno = 627 (0x273), region = 64 }
 0x263   : > { %v572_v60 = vpop.f32.mrb[0].mxu1 }
 0x264   : > { %v579_v62 = vadd.f32 %v572_v60, %v472_v59  ;;  %v794_v63 = vpop.f32.mrb[1].mxu1 }
 0x265   : > { %v575_v0 = vpop.f32.mrb[2].mxu1 }
 0x266   : > { %581 = vst [vmem:[#allocation2] sm:$0xff] %v579_v62  ;;  %v580_v1 = vadd.f32 %v575_v0, %v473_v61  ;;  %v795_v2 = vpop.f32.mrb[3].mxu1 }
 0x268   : > { %582 = vst [vmem:[#allocation2 + $0x8] sm:$0xff] %v580_v1 }
 0x26d   : > { %v587_v3 = vld [vmem:[#allocation2] sm:$0xff] }
 0x26e   : > { %v596_v6 = vadd.f32 %v742_v4, %v587_v3 }
 0x26f   : > { %v588_v5 = vld [vmem:[#allocation2 + $0x8] sm:$0xff] }
 0x270   : > { %v597_v7 = vadd.f32 %v742_v4, %v588_v5  ;;  %598 = vst [vmem:[#allocation9] sm:$0xff] %v596_v6 }
 0x272   : > { %599 = vst [vmem:[#allocation10] sm:$0xff] %v597_v7 }
 0x273 PF: > { %p826_p6 = scmp.eq.s32.totalorder %s1205_s21, 1  ;;  %s1083_s29 = smov [#allocation9]  }
 0x274   : > { %s607_s24 = sshll.u32 %s1083_s29, 4  ;;  %s1084_s13 = smov [#allocation10]   ;;  %s608_s24 = int_to_ptr.vmem [resolvable:$true] %s607_s24 }
 0x275   : > { %s618_s18 = sshll.u32 %s1084_s13, 4  ;;  %s974_s10 = scalar_lea.vmem %s608_s24, 128  ;;  %s619_s18 = int_to_ptr.vmem [resolvable:$true] %s618_s18 }
 0x276   : > { %p975_p0 = scmp.ne.s32.totalorder %s608_s24, %s974_s10  ;;  %p981_p7 = scmp.lt.s32.totalorder %s608_s24, %s608_s24 }
 0x277   : > { %p982_p12 = scmp.lt.s32.totalorder %s974_s10, %s974_s10 }
 0x278   : > { %p976_p4 = pnand %p975_p0, %p826_p6 }
 0x279   : > { %p983_p1 = por %p982_p12, %p981_p7 }
 0x27a   : > { %p977_p2 = pneg %p976_p4 }
 0x27c   : > { %p984_p3 = pnand %p983_p1, %p977_p2 }
 0x27e   : > { %987 = shalt.err (!%p984_p3)
}
 0x27f   : > { %s988_s27 = scalar_lea.hbm %s1387_s6, 128 }
 0x280   : > { %p989_p5 = scmp.ne.s32.totalorder %s1387_s6, %s988_s27  ;;  %p994_p9 = scmp.lt.u32.totalorder %s988_s27, %s1387_s6 }
 0x282   : > { %p990_p10 = pnand %p989_p5, %p826_p6 }
 0x284   : > { %p991_p11 = pneg %p990_p10 }
 0x286   : > { %p996_p8 = pnand %p994_p9, %p991_p11 }
 0x288   : > { %999 = shalt.err (!%p996_p8)
}
 0x289   : > { %805 = dma.vmem_to_hbm [thread:$0]  (%p826_p6), %s608_s24, 128, %s1387_s6, [#allocation5]  }
 0x28a   : > { %s1000_s20 = scalar_lea.vmem %s619_s18, 128  ;;  %p1007_p2 = scmp.lt.s32.totalorder %s619_s18, %s619_s18 }
 0x28b   : > { %p1001_p13 = scmp.ne.s32.totalorder %s619_s18, %s1000_s20  ;;  %p1008_p7 = scmp.lt.s32.totalorder %s1000_s20, %s1000_s20 }
 0x28d   : > { %p1002_p0 = pnand %p1001_p13, %p826_p6  ;;  %p1009_p12 = por %p1008_p7, %p1007_p2 }
 0x28f   : > { %p1003_p4 = pneg %p1002_p0 }
 0x291   : > { %p1010_p1 = pnand %p1009_p12, %p1003_p4 }
 0x293   : > { %1013 = shalt.err (!%p1010_p1)
}
 0x294   : > { %s1014_s17 = scalar_lea.hbm %s1388_s7, 128 }
 0x295   : > { %p1015_p3 = scmp.ne.s32.totalorder %s1388_s7, %s1014_s17  ;;  %p1020_p11 = scmp.lt.u32.totalorder %s1014_s17, %s1388_s7 }
 0x297   : > { %p1016_p5 = pnand %p1015_p3, %p826_p6 }
 0x299   : > { %p1017_p10 = pneg %p1016_p5 }
 0x29b   : > { %p1022_p9 = pnand %p1020_p11, %p1017_p10 }
 0x29d   : > { %1025 = shalt.err (!%p1022_p9)
}
 0x29e   : > { %807 = dma.vmem_to_hbm [thread:$0]  (%p826_p6), %s619_s18, 128, %s1388_s7, [#allocation11]  }
 0x29f   : > { %1051 = dma.done.wait (%p826_p6), [#allocation5], 128  }
 0x2a0   : > { %1053 = vsyncadd (%p826_p6), [#allocation5], 4294967168 }
 0x2a1   : > { %1055 = dma.done.wait (%p826_p6), [#allocation11], 128  }
 0x2a2   : > { %1057 = vsyncadd (%p826_p6), [#allocation11], 4294967168 }
 0x2a3 PF: > { %p21_p8 = scmp.ge.s32.totalorder %s1146_s28, 4   ;;  %s1413_s24 = smov %s1064_s25 }
 0x2a4   : > { %s1414_s25 = smov %s1068_s26  ;;  %s1415_s26 = smov %s1155_s8 }
 0x2a5   : > { %s1416_s27 = smov %s1146_s28  ;;  %23 = sbr.rel (!%p21_p8) target bundleno = 6 (0x6), region = 115 }
 0x2ac   :  { %635 = vsyncpa [#allocation4], 1 }
 0x2ad   :  { %637 = vsyncpa [#allocation4 + $0x1], 1 }
 0x2ae   :  { %638 = vsyncpa [#allocation7], 1 }
 0x2af   :  { %640 = vsyncpa [#allocation7 + $0x1], 1 }
 0x2b0   :  { %641 = vsyncpa [#allocation5], 1 }
 0x2b1   :  { %643 = vsyncpa [#allocation5 + $0x1], 1 }
 0x2b2   :  { %644 = vsyncpa [#allocation11], 1 }

</bundles_post_ra>
